<compile_context>
chip_gen: v5e
topology: v5e:2x2
jax: 0.10.0
libtpu: 0.0.40
codegen_flags: <defaults>
</compile_context>

<pallas_src>
from functools import partial

import jax
import jax.numpy as jnp
from jax.experimental import pallas as pl
from jax.experimental.pallas import tpu as pltpu

_LANES = 128
_MAX_BLOCK_ROWS = 4096          # (4096, 128) f32 block = 2 MiB per buffer


def _budget_kernel(p_ref, x_ref, o_ref):
    # p_ref: SMEM (3,) f32 = [1/flops_all, loss_mu, scale]
    # x_ref / o_ref: (block_rows, 128) f32 VMEM tiles (lane-dense).
    d = x_ref[...] * p_ref[0] - p_ref[1]
    o_ref[...] = d * d * p_ref[2]


@partial(jax.jit,
         static_argnames=("loss_weight", "loss_mu", "flops_all", "warm_up"))
def _budget_forward(flops_expt, warm_up_rate, *, loss_weight, loss_mu,
                    flops_all, warm_up):
    x = jnp.asarray(flops_expt, jnp.float32)

    if x.size == 0:                          # zero-size guard
        return jnp.zeros(x.shape, jnp.float32)

    # Warm-up gating: traced-safe (warm_up_rate may be a schedule tensor).
    if warm_up:
        wur = jnp.minimum(jnp.float32(1.0),
                          jnp.asarray(warm_up_rate, jnp.float32))
    else:
        wur = jnp.float32(1.0)
    scale = jnp.float32(loss_weight) * wur

    # (3,) f32 scalar params -> SMEM. No sqrt fold: robust to negative scale.
    params = jnp.stack([jnp.float32(1.0 / flops_all),
                        jnp.float32(loss_mu),
                        scale])

    # Present x as a lane-dense (rows, 128) slab.
    n = x.size
    flat = x.reshape(-1)
    if n % _LANES == 0:
        rows = n // _LANES                   # pure metadata reshape, no copy
        padded = False
    else:
        rows = -(-n // _LANES)               # pad only to the next lane row
        flat = jnp.pad(flat, (0, rows * _LANES - n))
        padded = True
    x2 = flat.reshape(rows, _LANES)

    # Block sizing: one full-array block when it fits (<= 2 MiB), else
    # 4096-row blocks (multiple of 8) with a pipeline-handled partial tail.
    if rows <= _MAX_BLOCK_ROWS:
        block_rows = rows
    else:
        block_rows = _MAX_BLOCK_ROWS
    grid = (pl.cdiv(rows, block_rows),)

    out = pl.pallas_call(
        _budget_kernel,
        out_shape=jax.ShapeDtypeStruct((rows, _LANES), jnp.float32),
        grid=grid,
        in_specs=[
            pl.BlockSpec(memory_space=pltpu.SMEM),                 # params
            pl.BlockSpec((block_rows, _LANES), lambda i: (i, 0)),  # x tile
        ],
        out_specs=pl.BlockSpec((block_rows, _LANES), lambda i: (i, 0)),
        compiler_params=pltpu.CompilerParams(
            dimension_semantics=("parallel",)),
        cost_estimate=pl.CostEstimate(flops=3 * rows * _LANES,
                                      transcendentals=0,
                                      bytes_accessed=8 * rows * _LANES),
    )(params, x2)

    if padded:
        return out.reshape(-1)[:n].reshape(x.shape)
    return out.reshape(x.shape)              # no slice copy on the fast path


class BudgetConstraint:
    """JAX/Pallas port of dl_lib BudgetConstraint (deterministic config values)."""

    def __init__(self, loss_weight=0.5, loss_mu=0.4, flops_all=1.0e9, warm_up=True):
        self.loss_weight = float(loss_weight)
        self.loss_mu = float(loss_mu)
        self.flops_all = float(flops_all)
        self.warm_up = bool(warm_up)

    def __call__(self, flops_expt, warm_up_rate=1.0):
        return _budget_forward(
            flops_expt, warm_up_rate,
            loss_weight=self.loss_weight, loss_mu=self.loss_mu,
            flops_all=self.flops_all, warm_up=self.warm_up)


def _reference(flops_expt, loss_weight, loss_mu, flops_all, warm_up, warm_up_rate):
    wur = min(1.0, float(warm_up_rate)) if warm_up else 1.0
    x = jnp.asarray(flops_expt, jnp.float32)
    return loss_weight * wur * (x / flops_all - loss_mu) ** 2


if __name__ == "__main__":
    key = jax.random.PRNGKey(0)
    k0, k1, k2, k3 = jax.random.split(key, 4)

    module = BudgetConstraint(
        loss_weight=0.5, loss_mu=0.4, flops_all=1.0e9, warm_up=True
    )

    # Case 1: scalar expected-FLOPs (the typical usage in dynamic4seg).
    flops_scalar = jax.random.uniform(k0, (), minval=0.1, maxval=1.0) * 1.0e9
    loss_scalar = module(flops_scalar, warm_up_rate=0.3)
    jax.block_until_ready(loss_scalar)
    ref_scalar = _reference(flops_scalar, 0.5, 0.4, 1.0e9, True, 0.3)
    assert jnp.allclose(loss_scalar, ref_scalar, rtol=1e-5, atol=1e-6)

    # Case 2: small batched expected-FLOPs tensor (2, 8); warm_up_rate clips to 1.
    flops_batch = jax.random.uniform(k1, (2, 8), minval=0.1, maxval=1.0) * 1.0e9
    loss_batch = module(flops_batch, warm_up_rate=2.0)
    jax.block_until_ready(loss_batch)
    ref_batch = _reference(flops_batch, 0.5, 0.4, 1.0e9, True, 2.0)
    assert loss_batch.shape == (2, 8)
    assert jnp.allclose(loss_batch, ref_batch, rtol=1e-5, atol=1e-6)

    # Case 3: lane-misaligned per-sample FLOPs map — exercises the padded path.
    flops_map = jax.random.uniform(k2, (300, 300), minval=0.1, maxval=1.0) * 1.0e9
    loss_map = module(flops_map, warm_up_rate=0.7)
    jax.block_until_ready(loss_map)
    ref_map = _reference(flops_map, 0.5, 0.4, 1.0e9, True, 0.7)
    assert loss_map.shape == (300, 300)
    assert jnp.allclose(loss_map, ref_map, rtol=1e-5, atol=1e-6)

    # Case 4: lane-aligned map — fast path (no pad/slice), multi-block
    # "parallel" grid with a trailing partial block (5120 rows -> 4096 + 1024).
    flops_big = jax.random.uniform(k3, (1024, 640), minval=0.1, maxval=1.0) * 1.0e9
    loss_big = module(flops_big, warm_up_rate=0.7)
    jax.block_until_ready(loss_big)
    ref_big = _reference(flops_big, 0.5, 0.4, 1.0e9, True, 0.7)
    assert loss_big.shape == (1024, 640)
    assert jnp.allclose(loss_big, ref_big, rtol=1e-5, atol=1e-6)

    print("KERNEL_OK")
</pallas_src>

<mosaic_0001>
module attributes {stable_mosaic.version = 11 : i64} {
  func.func @_budget_kernel(%arg0: i32, %arg1: memref<3xf32, #tpu.memory_space<smem>>, %arg2: memref<1x128xf32, #tpu.memory_space<vmem>>, %arg3: memref<1x128xf32, #tpu.memory_space<vmem>>) attributes {dimension_semantics = [#tpu.dimension_semantics<parallel>], iteration_bounds = array<i64: 1>, scalar_prefetch = 0 : i64, scratch_operands = 0 : i64, tpu.core_type = #tpu.core_type<tc>, window_params = [{transform_indices = @transform_0, window_bounds = array<i64: 3>}, {transform_indices = @transform_1, window_bounds = array<i64: 1, 128>}, {transform_indices = @transform_2, window_bounds = array<i64: 1, 128>}]} {
    %c0 = arith.constant 0 : index
    %c0_0 = arith.constant 0 : index
    %0 = vector.load %arg2[%c0, %c0_0] : memref<1x128xf32, #tpu.memory_space<vmem>>, vector<1x128xf32>
    %c0_1 = arith.constant 0 : index
    %1 = memref.load %arg1[%c0_1] : memref<3xf32, #tpu.memory_space<smem>>
    %2 = vector.broadcast %1 : f32 to vector<1x128xf32>
    %3 = arith.mulf %0, %2 : vector<1x128xf32>
    %c1 = arith.constant 1 : index
    %4 = memref.load %arg1[%c1] : memref<3xf32, #tpu.memory_space<smem>>
    %5 = vector.broadcast %4 : f32 to vector<1x128xf32>
    %6 = arith.subf %3, %5 : vector<1x128xf32>
    %7 = arith.mulf %6, %6 : vector<1x128xf32>
    %c2 = arith.constant 2 : index
    %8 = memref.load %arg1[%c2] : memref<3xf32, #tpu.memory_space<smem>>
    %9 = vector.broadcast %8 : f32 to vector<1x128xf32>
    %10 = arith.mulf %7, %9 : vector<1x128xf32>
    %c0_2 = arith.constant 0 : index
    %c0_3 = arith.constant 0 : index
    %11 = vector.load %arg3[%c0_2, %c0_3] : memref<1x128xf32, #tpu.memory_space<vmem>>, vector<1x128xf32>
    tpu.vector_store %arg3[%c0_2, %c0_3], %10 {strides = array<i32>} : memref<1x128xf32, #tpu.memory_space<vmem>>, vector<1x128xf32>,
    return
  }
  func.func @transform_0(%arg0: i32) -> i32 {
    %c0_i32 = arith.constant 0 : i32
    %c0_i32_0 = arith.constant 0 : i32
    return %c0_i32 : i32
  }
  func.func @transform_1(%arg0: i32) -> (i32, i32) {
    %c0_i32 = arith.constant 0 : i32
    %c0_i32_0 = arith.constant 0 : i32
    return %arg0, %c0_i32 : i32, i32
  }
  func.func @transform_2(%arg0: i32) -> (i32, i32) {
    %c0_i32 = arith.constant 0 : i32
    %c0_i32_0 = arith.constant 0 : i32
    return %arg0, %c0_i32 : i32, i32
  }
}

</mosaic_0001>

<bundles_post_ra>
// kernel: _budget_forward.1
= control target key start
LH: loop header
LB: loop body
LE: loop exit
PB: predicated region body
PF: predicated region fallthrough
CT: control target
= control target key end

     0   :  { %7 = vsyncpa [#allocation4], 0  ;;  %s124_s0 = inlined_call_operand.vmem [shape: f32[3], index: 0, kind: input, shape index: {}]   ;;  %s125_s1 = inlined_call_operand.vmem [shape: f32[1,128], index: 1, kind: input, shape index: {}]   ;;  %s126_s2 = inlined_call_operand.hbm [shape: f32[1,128], index: 2, kind: output, shape index: {}]  }
   0x1   :  { %8 = vsyncpa [#allocation3], 0  ;;  %s14_s11 = sshll.u32 %s124_s0, 4  ;;  %s98_s12 = smov [#allocation2]   ;;  %s15_s11 = int_to_ptr.vmem [resolvable:$true] %s14_s11 }
   0x2   :  { %17 = dma.vmem_to_smem %s15_s11, 16, %s98_s12, [#allocation4]  }
   0x3   :  { %94 = dma.done.wait [#allocation4], 16  }
   0x4   :  { %95 = vsyncadd [#allocation4], 4294967280 }
   0x5   :  { %24 = sfence }
   0x6   :  { %s26_s13 = sld [smem:[#allocation2]]  ;;  %v25_v0 = vld [vmem:[%s125_s1] sm:$0x1]  ;;  %s99_s18 = smov [#allocation5]  }
   0x7   :  { %s54_s14 = sld [smem:[#allocation2 + $0x1]]  ;;  %s42_s0 = sshll.u32 %s99_s18, 4  ;;  %s43_s0 = int_to_ptr.vmem [resolvable:$true] %s42_s0 }
   0x8   :  { %s55_s15 = sld [smem:[#allocation2 + $0x2]]  ;;  %s44_s21 = sshll.u32 %s126_s2, 4  ;;  %s45_s21 = int_to_ptr.hbm [resolvable:$true] %s44_s21 }
   0xc   :  { %v27_v1 = vstv %s26_s13 }
   0xd   :  { %v28_v2 = vmul.f32 %v27_v1, %v25_v0  ;;  %v30_v3 = vstv %s54_s14 }
   0xe   :  { %v34_v5 = vstv %s55_s15 }
   0xf   :  { %v31_v4 = vsub.f32 %v28_v2, %v30_v3 }
  0x11   :  { %v32_v6 = vmul.f32 %v31_v4, %v31_v4 }
  0x13   :  { %v35_v7 = vmul.f32 %v34_v5, %v32_v6 }
  0x15   :  { %36 = vst [vmem:[#allocation5] sm:$0x1] %v35_v7 }
  0x16   :  { %47 = dma.vmem_to_hbm [thread:$0]  %s43_s0, 16, %s45_s21, [#allocation3]  }
  0x17   :  { %96 = dma.done.wait [#allocation3], 16  }
  0x18   :  { %97 = vsyncadd [#allocation3], 4294967280 }
  0x19   :  { %52 = vsyncpa [#allocation3], 1 }
  0x1a   :  { %53 = vsyncpa [#allocation4], 1 }

</bundles_post_ra>
